<compile_context>
chip_gen: v5e
topology: v5e:2x2
jax: 0.10.0
libtpu: 0.0.40
codegen_flags: <defaults>
</compile_context>

<pallas_src>
import jax
import jax.numpy as jnp
from jax.experimental import pallas as pl
from jax.experimental.pallas import tpu as pltpu


def _round_up(n, m):
    return ((n + m - 1) // m) * m


def qnetwork_kernel(x_ref, w1_ref, b1_ref, w2_ref, b2_ref, w3_ref, b3_ref,
                    o_ref):
    """Fused MLP forward: bf16 MXU operands, f32 accumulate / bias / ReLU."""
    x = x_ref[...].astype(jnp.bfloat16)                      # in-kernel cast (VPU)

    # Layer 1: Linear(state_dim -> hidden) + ReLU
    h1 = jnp.dot(x, w1_ref[...], preferred_element_type=jnp.float32)
    h1 = jnp.maximum(h1 + b1_ref[...], 0.0)                  # f32

    # Layer 2: Linear(hidden -> hidden) + ReLU
    h2 = jnp.dot(h1.astype(jnp.bfloat16), w2_ref[...],
                 preferred_element_type=jnp.float32)
    h2 = jnp.maximum(h2 + b2_ref[...], 0.0)

    # Layer 3: Linear(hidden -> action_dim), no activation.
    out = jnp.dot(h2.astype(jnp.bfloat16), w3_ref[...],
                  preferred_element_type=jnp.float32)
    o_ref[...] = (out + b3_ref[...]).astype(o_ref.dtype)     # true-width store


def prepare_params(params):
    """One-time prep: weights -> bf16 (MXU operands), biases -> f32.

    Keep the result and reuse it across forward calls so no per-call casting /
    copying of the weights happens in the hot path.
    """
    return {
        "w1": params["w1"].astype(jnp.bfloat16),
        "b1": params["b1"].astype(jnp.float32),
        "w2": params["w2"].astype(jnp.bfloat16),
        "b2": params["b2"].astype(jnp.float32),
        "w3": params["w3"].astype(jnp.bfloat16),
        "b3": params["b3"].astype(jnp.float32),
    }


def qnetwork_forward(x, prepared, *, batch_tile=None):
    """x: [B, state_dim] float32. prepared: output of prepare_params()."""
    w1, b1, w2, b2, w3, b3 = (prepared[k] for k in
                              ("w1", "b1", "w2", "b2", "w3", "b3"))
    B, state_dim = x.shape
    hidden = w1.shape[1]
    action_dim = w3.shape[1]

    if batch_tile is None:
        # Small/demo batches: one grid step (everything fits in VMEM; avoids
        # per-step overhead + a pipeline too shallow to hide the weight DMA).
        # Large batches: 512-row tiles keep HBM streaming near roofline while
        # staying tiny (<2 MiB/buffer) in VMEM on every generation incl. v7x.
        batch_tile = _round_up(B, 8) if B <= 1024 else 512
    tb = batch_tile

    B_pad = _round_up(B, tb)
    if B_pad != B:
        x = jnp.pad(x, ((0, B_pad - B), (0, 0)))
    nb = B_pad // tb

    resident = lambda shape: pl.BlockSpec(shape, lambda i: (0, 0))

    flops = 2 * B_pad * (state_dim * hidden + hidden * hidden
                         + hidden * action_dim)
    bytes_accessed = (B_pad * state_dim * 4                        # x (f32)
                      + (state_dim * hidden + hidden * hidden
                         + hidden * action_dim) * 2                # weights bf16
                      + (2 * hidden + action_dim) * 4              # biases f32
                      + B_pad * action_dim * 4)                    # out (f32)

    out = pl.pallas_call(
        qnetwork_kernel,
        out_shape=jax.ShapeDtypeStruct((B_pad, action_dim), jnp.float32),
        grid=(nb,),
        in_specs=[
            pl.BlockSpec((tb, state_dim), lambda i: (i, 0)),  # x tiles pipeline
            resident((state_dim, hidden)),                    # weights/biases
            resident((1, hidden)),                            # stay VMEM-
            resident((hidden, hidden)),                       # resident across
            resident((1, hidden)),                            # all batch tiles
            resident((hidden, action_dim)),
            resident((1, action_dim)),
        ],
        out_specs=pl.BlockSpec((tb, action_dim), lambda i: (i, 0)),
        compiler_params=pltpu.CompilerParams(
            dimension_semantics=("parallel",)),  # v7x 2-TC split on big grids
        cost_estimate=pl.CostEstimate(
            flops=flops, transcendentals=0, bytes_accessed=bytes_accessed),
    )(x, w1, b1, w2, b2, w3, b3)

    return out[:B] if B_pad != B else out


def init_params(key, state_dim, action_dim, hidden=128):
    """Deterministic PyTorch-style init. Weights stored transposed: [in, out]."""
    ks = jax.random.split(key, 6)
    scale = lambda fan_in: 1.0 / jnp.sqrt(jnp.float32(fan_in))
    return {
        "w1": jax.random.uniform(ks[0], (state_dim, hidden), jnp.float32,
                                 -scale(state_dim), scale(state_dim)),
        "b1": jax.random.uniform(ks[1], (1, hidden), jnp.float32,
                                 -scale(state_dim), scale(state_dim)),
        "w2": jax.random.uniform(ks[2], (hidden, hidden), jnp.float32,
                                 -scale(hidden), scale(hidden)),
        "b2": jax.random.uniform(ks[3], (1, hidden), jnp.float32,
                                 -scale(hidden), scale(hidden)),
        "w3": jax.random.uniform(ks[4], (hidden, action_dim), jnp.float32,
                                 -scale(hidden), scale(hidden)),
        "b3": jax.random.uniform(ks[5], (1, action_dim), jnp.float32,
                                 -scale(hidden), scale(hidden)),
    }


def reference_forward(x, p):
    """Same math as the kernel: bf16 matmul operands, f32 accumulation."""
    bf16 = jnp.bfloat16
    h1 = jnp.maximum(
        jnp.dot(x.astype(bf16), p["w1"].astype(bf16),
                preferred_element_type=jnp.float32) + p["b1"], 0.0)
    h2 = jnp.maximum(
        jnp.dot(h1.astype(bf16), p["w2"].astype(bf16),
                preferred_element_type=jnp.float32) + p["b2"], 0.0)
    return jnp.dot(h2.astype(bf16), p["w3"].astype(bf16),
                   preferred_element_type=jnp.float32) + p["b3"]


if __name__ == "__main__":
    # LunarLander-like sizes: state_dim=8, action_dim=4, hidden=128.
    # Small demo batch=64 -> single grid step, whole problem resident in VMEM.
    state_dim, action_dim, hidden, batch = 8, 4, 128, 64

    key = jax.random.PRNGKey(0)
    pkey, xkey = jax.random.split(key)
    params = init_params(pkey, state_dim, action_dim, hidden)
    prepared = prepare_params(params)   # one-time, outside the hot path
    x = jax.random.normal(xkey, (batch, state_dim), jnp.float32)

    out = qnetwork_forward(x, prepared)
    out = jax.block_until_ready(out)

    ref = reference_forward(x, params)
    assert out.shape == (batch, action_dim)
    assert jnp.allclose(out, ref, atol=5e-3, rtol=5e-3), "mismatch vs reference"

    print("KERNEL_OK")
</pallas_src>

<mosaic_0001>
module attributes {stable_mosaic.version = 11 : i64} {
  func.func @qnetwork_kernel(%arg0: i32, %arg1: memref<64x8xf32, #tpu.memory_space<vmem>>, %arg2: memref<8x128xbf16, #tpu.memory_space<vmem>>, %arg3: memref<1x128xf32, #tpu.memory_space<vmem>>, %arg4: memref<128x128xbf16, #tpu.memory_space<vmem>>, %arg5: memref<1x128xf32, #tpu.memory_space<vmem>>, %arg6: memref<128x4xbf16, #tpu.memory_space<vmem>>, %arg7: memref<1x4xf32, #tpu.memory_space<vmem>>, %arg8: memref<64x4xf32, #tpu.memory_space<vmem>>) attributes {dimension_semantics = [#tpu.dimension_semantics<parallel>], iteration_bounds = array<i64: 1>, scalar_prefetch = 0 : i64, scratch_operands = 0 : i64, tpu.core_type = #tpu.core_type<tc>, window_params = [{transform_indices = @transform_0, window_bounds = array<i64: 64, 8>}, {pipeline_mode = #tpu.pipeline_mode<synchronous>, transform_indices = @transform_1, window_bounds = array<i64: 8, 128>}, {pipeline_mode = #tpu.pipeline_mode<synchronous>, transform_indices = @transform_2, window_bounds = array<i64: 1, 128>}, {pipeline_mode = #tpu.pipeline_mode<synchronous>, transform_indices = @transform_3, window_bounds = array<i64: 128, 128>}, {pipeline_mode = #tpu.pipeline_mode<synchronous>, transform_indices = @transform_4, window_bounds = array<i64: 1, 128>}, {pipeline_mode = #tpu.pipeline_mode<synchronous>, transform_indices = @transform_5, window_bounds = array<i64: 128, 4>}, {pipeline_mode = #tpu.pipeline_mode<synchronous>, transform_indices = @transform_6, window_bounds = array<i64: 1, 4>}, {transform_indices = @transform_7, window_bounds = array<i64: 64, 4>}]} {
    %c0 = arith.constant 0 : index
    %c0_0 = arith.constant 0 : index
    %0 = vector.load %arg1[%c0, %c0_0] : memref<64x8xf32, #tpu.memory_space<vmem>>, vector<64x8xf32>
    %1 = arith.truncf %0 : vector<64x8xf32> to vector<64x8xbf16>
    %c0_1 = arith.constant 0 : index
    %c0_2 = arith.constant 0 : index
    %2 = vector.load %arg2[%c0_1, %c0_2] : memref<8x128xbf16, #tpu.memory_space<vmem>>, vector<8x128xbf16>
    %cst = arith.constant dense<0.000000e+00> : vector<64x128xf32>
    %3 = tpu.matmul %1, %2, %cst {dimension_numbers = #tpu.dot_dimension_numbers<[1], [0], [0], [1], [0, 0, 1, 1], [], []>} : vector<64x8xbf16>, vector<8x128xbf16>, vector<64x128xf32> -> vector<64x128xf32>
    %c0_3 = arith.constant 0 : index
    %c0_4 = arith.constant 0 : index
    %4 = vector.load %arg3[%c0_3, %c0_4] : memref<1x128xf32, #tpu.memory_space<vmem>>, vector<1x128xf32>
    %5 = vector.broadcast %4 : vector<1x128xf32> to vector<64x128xf32>
    %6 = arith.addf %3, %5 : vector<64x128xf32>
    %cst_5 = arith.constant 0.000000e+00 : f32
    %7 = vector.broadcast %cst_5 : f32 to vector<64x128xf32>
    %8 = arith.maximumf %6, %7 : vector<64x128xf32>
    %9 = arith.truncf %8 : vector<64x128xf32> to vector<64x128xbf16>
    %c0_6 = arith.constant 0 : index
    %c0_7 = arith.constant 0 : index
    %10 = vector.load %arg4[%c0_6, %c0_7] : memref<128x128xbf16, #tpu.memory_space<vmem>>, vector<128x128xbf16>
    %cst_8 = arith.constant dense<0.000000e+00> : vector<64x128xf32>
    %11 = tpu.matmul %9, %10, %cst_8 {dimension_numbers = #tpu.dot_dimension_numbers<[1], [0], [0], [1], [0, 0, 1, 1], [], []>} : vector<64x128xbf16>, vector<128x128xbf16>, vector<64x128xf32> -> vector<64x128xf32>
    %c0_9 = arith.constant 0 : index
    %c0_10 = arith.constant 0 : index
    %12 = vector.load %arg5[%c0_9, %c0_10] : memref<1x128xf32, #tpu.memory_space<vmem>>, vector<1x128xf32>
    %13 = vector.broadcast %12 : vector<1x128xf32> to vector<64x128xf32>
    %14 = arith.addf %11, %13 : vector<64x128xf32>
    %cst_11 = arith.constant 0.000000e+00 : f32
    %15 = vector.broadcast %cst_11 : f32 to vector<64x128xf32>
    %16 = arith.maximumf %14, %15 : vector<64x128xf32>
    %17 = arith.truncf %16 : vector<64x128xf32> to vector<64x128xbf16>
    %c0_12 = arith.constant 0 : index
    %c0_13 = arith.constant 0 : index
    %18 = vector.load %arg6[%c0_12, %c0_13] : memref<128x4xbf16, #tpu.memory_space<vmem>>, vector<128x4xbf16>
    %cst_14 = arith.constant dense<0.000000e+00> : vector<64x4xf32>
    %19 = tpu.matmul %17, %18, %cst_14 {dimension_numbers = #tpu.dot_dimension_numbers<[1], [0], [0], [1], [0, 0, 1, 1], [], []>} : vector<64x128xbf16>, vector<128x4xbf16>, vector<64x4xf32> -> vector<64x4xf32>
    %c0_15 = arith.constant 0 : index
    %c0_16 = arith.constant 0 : index
    %20 = vector.load %arg7[%c0_15, %c0_16] : memref<1x4xf32, #tpu.memory_space<vmem>>, vector<1x4xf32>
    %21 = vector.broadcast %20 : vector<1x4xf32> to vector<64x4xf32>
    %22 = arith.addf %19, %21 : vector<64x4xf32>
    %c0_17 = arith.constant 0 : index
    %c0_18 = arith.constant 0 : index
    %23 = vector.load %arg8[%c0_17, %c0_18] : memref<64x4xf32, #tpu.memory_space<vmem>>, vector<64x4xf32>
    tpu.vector_store %arg8[%c0_17, %c0_18], %22 {strides = array<i32>} : memref<64x4xf32, #tpu.memory_space<vmem>>, vector<64x4xf32>,
    return
  }
  func.func @transform_0(%arg0: i32) -> (i32, i32) {
    %c0_i32 = arith.constant 0 : i32
    %c0_i32_0 = arith.constant 0 : i32
    return %arg0, %c0_i32 : i32, i32
  }
  func.func @transform_1(%arg0: i32) -> (i32, i32) {
    %c0_i32 = arith.constant 0 : i32
    %c0_i32_0 = arith.constant 0 : i32
    %c0_i32_1 = arith.constant 0 : i32
    return %c0_i32, %c0_i32_0 : i32, i32
  }
  func.func @transform_2(%arg0: i32) -> (i32, i32) {
    %c0_i32 = arith.constant 0 : i32
    %c0_i32_0 = arith.constant 0 : i32
    %c0_i32_1 = arith.constant 0 : i32
    return %c0_i32, %c0_i32_0 : i32, i32
  }
  func.func @transform_3(%arg0: i32) -> (i32, i32) {
    %c0_i32 = arith.constant 0 : i32
    %c0_i32_0 = arith.constant 0 : i32
    %c0_i32_1 = arith.constant 0 : i32
    return %c0_i32, %c0_i32_0 : i32, i32
  }
  func.func @transform_4(%arg0: i32) -> (i32, i32) {
    %c0_i32 = arith.constant 0 : i32
    %c0_i32_0 = arith.constant 0 : i32
    %c0_i32_1 = arith.constant 0 : i32
    return %c0_i32, %c0_i32_0 : i32, i32
  }
  func.func @transform_5(%arg0: i32) -> (i32, i32) {
    %c0_i32 = arith.constant 0 : i32
    %c0_i32_0 = arith.constant 0 : i32
    %c0_i32_1 = arith.constant 0 : i32
    return %c0_i32, %c0_i32_0 : i32, i32
  }
  func.func @transform_6(%arg0: i32) -> (i32, i32) {
    %c0_i32 = arith.constant 0 : i32
    %c0_i32_0 = arith.constant 0 : i32
    %c0_i32_1 = arith.constant 0 : i32
    return %c0_i32, %c0_i32_0 : i32, i32
  }
  func.func @transform_7(%arg0: i32) -> (i32, i32) {
    %c0_i32 = arith.constant 0 : i32
    %c0_i32_0 = arith.constant 0 : i32
    return %arg0, %c0_i32 : i32, i32
  }
}

</mosaic_0001>

<bundles_post_ra>
// kernel: tpu_custom_call.1
= control target key start
LH: loop header
LB: loop body
LE: loop exit
PB: predicated region body
PF: predicated region fallthrough
CT: control target
= control target key end

     0   :  { %vm57_vm0 = vcmask 1043456   ;;  %vm44_vm1 = vcmask 64512   ;;  %vm308_vm2 = vcmask 31744   ;;  %s584_s1 = inlined_call_operand.vmem [shape: bf16[8,128], index: 1, kind: input, shape index: {}]   ;;  %s585_s0 = inlined_call_operand.vmem [shape: f32[64,8], index: 0, kind: input, shape index: {}]   ;;  %s586_s2 = inlined_call_operand.vmem [shape: f32[1,128], index: 2, kind: input, shape index: {}]   ;;  %s587_s3 = inlined_call_operand.vmem [shape: bf16[128,128], index: 3, kind: input, shape index: {}]   ;;  %s588_s4 = inlined_call_operand.vmem [shape: f32[1,128], index: 4, kind: input, shape index: {}]   ;;  %s589_s5 = inlined_call_operand.vmem [shape: bf16[128,4], index: 5, kind: input, shape index: {}]   ;;  %s590_s6 = inlined_call_operand.vmem [shape: f32[1,4], index: 6, kind: input, shape index: {}]   ;;  %s591_s7 = inlined_call_operand.vmem [shape: f32[64,4], index: 7, kind: output, shape index: {}]  }
   0x1   :  { %v39_v0 = vld [vmem:[%s584_s1] sm:$0xf]  ;;  %v28_v2 = vld [vmem:[%s585_s0 + $0x8] sm:$0xff]  ;;  %v29_v5 = vld [vmem:[%s585_s0 + $0x10] sm:$0xff] }
   0x2   :  { %v27_v1 = vld [vmem:[%s585_s0] sm:$0xff]  ;;  %v59_v3 = vsel %vm57_vm0, %v39_v0, 0  ;;  %v30_v6 = vld [vmem:[%s585_s0 + $0x18] sm:$0xff]  ;;  %v395_v9 = vld [vmem:[%s587_s3 + $0x30] sm:$0xff] }
   0x3   :  { %v35_v4 = vpack.c.bf16 %v28_v2, %v27_v1  ;;  %68 = vmatpush.bf16.msra.mxu0 %v59_v3  ;;  %v36_v7 = vpack.c.bf16 %v30_v6, %v29_v5  ;;  %v396_v8 = vld [vmem:[%s587_s3 + $0x38] sm:$0xff]  ;;  %v394_v10 = vld [vmem:[%s587_s3 + $0x28] sm:$0xff]  ;;  %v31_v11 = vld [vmem:[%s585_s0 + $0x20] sm:$0xff] }
   0x4   :  { %170 = vmatpush.bf16.msra.mxu1 %v396_v8  ;;  %405 = vmatpush.bf16.msra.mxu3 %v396_v8  ;;  %v32_v12 = vld [vmem:[%s585_s0 + $0x28] sm:$0xff]  ;;  %v393_v13 = vld [vmem:[%s587_s3 + $0x20] sm:$0xff]  ;;  %v33_v15 = vld [vmem:[%s585_s0 + $0x30] sm:$0xff] }
   0x5   :  { %v37_v14 = vpack.c.bf16 %v32_v12, %v31_v11  ;;  %v34_v16 = vld [vmem:[%s585_s0 + $0x38] sm:$0xff]  ;;  %v391_v19 = vld [vmem:[%s587_s3 + $0x10] sm:$0xff]  ;;  %v390_v20 = vld [vmem:[%s587_s3 + $0x8] sm:$0xff] }
   0x6   :  { %321 = vmatmul.msk.bf16.vlgmr.msra.gmra.mxu0 %vm44_vm1, %v35_v4  ;;  %v38_v17 = vpack.c.bf16 %v34_v16, %v33_v15  ;;  %v392_v18 = vld [vmem:[%s587_s3 + $0x18] sm:$0xff]  ;;  %v389_v21 = vld [vmem:[%s587_s3] sm:$0xff]  ;;  %v403_v39 = vld [vmem:[%s589_s5 + $0x30] sm:$0xff] }
   0x7   :  { %v421_v23 = vld [vmem:[%s586_s2] ss:$0 sm:$0xff]  ;;  %v404_v37 = vld [vmem:[%s589_s5 + $0x38] sm:$0xff]  ;;  %v402_v40 = vld [vmem:[%s589_s5 + $0x28] sm:$0xff] }
   0x8   :  { %171 = vmatpush.bf16.msra.mxu1 %v395_v9  ;;  %406 = vmatpush.bf16.msra.mxu3 %v395_v9  ;;  %v401_v44 = vld [vmem:[%s589_s5 + $0x20] sm:$0xff]  ;;  %v400_v55 = vld [vmem:[%s589_s5 + $0x18] sm:$0xff]  ;;  %v399_v56 = vld [vmem:[%s589_s5 + $0x10] sm:$0xff] }
   0x9   :  { %413 = vmatpush.bf16.msra.mxu2 %v404_v37  ;;  %v398_v57 = vld [vmem:[%s589_s5 + $0x8] sm:$0xff]  ;;  %v397_v58 = vld [vmem:[%s589_s5] sm:$0xff] }
   0xa   :  { %v422_v60 = vld [vmem:[%s588_s4] ss:$0 sm:$0xff] }
   0xc   :  { %172 = vmatpush.bf16.msra.mxu1 %v394_v10  ;;  %407 = vmatpush.bf16.msra.mxu3 %v394_v10 }
   0xd   :  { %414 = vmatpush.bf16.msra.mxu2 %v403_v39 }
  0x10   :  { %173 = vmatpush.bf16.msra.mxu1 %v393_v13  ;;  %408 = vmatpush.bf16.msra.mxu3 %v393_v13 }
  0x11   :  { %415 = vmatpush.bf16.msra.mxu2 %v402_v40 }
  0x14   :  { %174 = vmatpush.bf16.msra.mxu1 %v392_v18  ;;  %409 = vmatpush.bf16.msra.mxu3 %v392_v18 }
  0x15   :  { %416 = vmatpush.bf16.msra.mxu2 %v401_v44 }
  0x16   :  { %322 = vmatmul.msk.bf16.gmra.mxu0 %vm44_vm1, %v36_v7 }
  0x18   :  { %175 = vmatpush.bf16.msra.mxu1 %v391_v19  ;;  %410 = vmatpush.bf16.msra.mxu3 %v391_v19 }
  0x19   :  { %417 = vmatpush.bf16.msra.mxu2 %v400_v55 }
  0x1c   :  { %176 = vmatpush.bf16.msra.mxu1 %v390_v20  ;;  %411 = vmatpush.bf16.msra.mxu3 %v390_v20 }
  0x1d   :  { %418 = vmatpush.bf16.msra.mxu2 %v399_v56 }
  0x20   :  { %177 = vmatpush.bf16.msra.mxu1 %v389_v21  ;;  %412 = vmatpush.bf16.msra.mxu3 %v389_v21 }
  0x21   :  { %419 = vmatpush.bf16.msra.mxu2 %v398_v57 }
  0x24   :  { %279 = vmatpush.bf16.msrb.mxu1 %v404_v37 }
  0x25   :  { %420 = vmatpush.bf16.msra.mxu2 %v397_v58 }
  0x26   :  { %323 = vmatmul.msk.bf16.gmra.mxu0 %vm44_vm1, %v37_v14 }
  0x28   :  { %280 = vmatpush.bf16.msrb.mxu1 %v403_v39 }
  0x2c   :  { %281 = vmatpush.bf16.msrb.mxu1 %v402_v40 }
  0x30   :  { %282 = vmatpush.bf16.msrb.mxu1 %v401_v44 }
  0x34   :  { %283 = vmatpush.bf16.msrb.mxu1 %v400_v55 }
  0x36   :  { %324 = vmatmul.msk.bf16.gmra.mxu0 %vm44_vm1, %v38_v17 }
  0x38   :  { %284 = vmatpush.bf16.msrb.mxu1 %v399_v56 }
  0x3c   :  { %285 = vmatpush.bf16.msrb.mxu1 %v398_v57 }
  0x40   :  { %286 = vmatpush.bf16.msrb.mxu1 %v397_v58 }
  0x83   :  { %v70_v22 = vpop.f32.mrf.mxu0 }
  0x84   :  { %v71_v24 = vadd.f32 %v421_v23, %v70_v22 }
  0x86   :  { %v90_v27 = vmax.f32 %v71_v24, 0.0  ;;  %v423_v24 = vld [vmem:[%s590_s6] ss:$0 sm:$0xff] }
  0x8b   :  { %v72_v25 = vpop.f32.mrf.mxu0 }
  0x8c   :  { %v73_v26 = vadd.f32 %v421_v23, %v72_v25 }
  0x8e   :  { %v91_v28 = vmax.f32 %v73_v26, 0.0 }
  0x90   :  { %v98_v29 = vpack.c.bf16 %v91_v28, %v90_v27 }
  0x92   :  { %178 = vmatmul.bf16.vlgmr.msra.gmra.mxu1 %v98_v29 }
  0x93   :  { %v75_v30 = vpop.f32.mrf.mxu0 }
  0x94   :  { %v76_v31 = vadd.f32 %v421_v23, %v75_v30 }
  0x96   :  { %v92_v34 = vmax.f32 %v76_v31, 0.0 }
  0x9b   :  { %v77_v32 = vpop.f32.mrf.mxu0 }
  0x9c   :  { %v78_v33 = vadd.f32 %v421_v23, %v77_v32 }
  0x9e   :  { %v93_v35 = vmax.f32 %v78_v33, 0.0 }
  0xa0   :  { %v99_v36 = vpack.c.bf16 %v93_v35, %v92_v34 }
  0xa2   :  { %183 = vmatmul.bf16.vlgmr.msra.gmra.mxu3 %v99_v36 }
  0xa3   :  { %v80_v38 = vpop.f32.mrf.mxu0 }
  0xa4   :  { %v81_v41 = vadd.f32 %v421_v23, %v80_v38 }
  0xa6   :  { %v94_v45 = vmax.f32 %v81_v41, 0.0 }
  0xab   :  { %v82_v42 = vpop.f32.mrf.mxu0 }
  0xac   :  { %v83_v43 = vadd.f32 %v421_v23, %v82_v42 }
  0xae   :  { %v95_v46 = vmax.f32 %v83_v43, 0.0 }
  0xb0   :  { %v100_v47 = vpack.c.bf16 %v95_v46, %v94_v45 }
  0xb2   :  { %188 = vmatmul.bf16.gmra.mxu3 %v100_v47 }
  0xb3   :  { %v85_v48 = vpop.f32.mrf.mxu0 }
  0xb4   :  { %v86_v49 = vadd.f32 %v421_v23, %v85_v48 }
  0xb6   :  { %v96_v52 = vmax.f32 %v86_v49, 0.0 }
  0xbb   :  { %v87_v50 = vpop.f32.mrf.mxu0 }
  0xbc   :  { %v88_v51 = vadd.f32 %v421_v23, %v87_v50 }
  0xbe   :  { %v97_v53 = vmax.f32 %v88_v51, 0.0 }
  0xc0   :  { %v101_v54 = vpack.c.bf16 %v97_v53, %v96_v52 }
  0xc2   :  { %193 = vmatmul.bf16.gmra.mxu3 %v101_v54 }
 0x10f   :  { %v179_v59 = vpop.f32.mrf.mxu1 }
 0x110   :  { %v180_v61 = vadd.f32 %v422_v60, %v179_v59 }
 0x112   :  { %v199_v0 = vmax.f32 %v180_v61, 0.0 }
 0x117   :  { %v181_v62 = vpop.f32.mrf.mxu1 }
 0x118   :  { %v182_v63 = vadd.f32 %v422_v60, %v181_v62 }
 0x11a   :  { %v200_v1 = vmax.f32 %v182_v63, 0.0 }
 0x11c   :  { %v207_v2 = vpack.c.bf16 %v200_v1, %v199_v0 }
 0x11e   :  { %287 = vmatmul.bf16.vlgmr.msrb.gmra.mxu1 %v207_v2 }
 0x125   :  { %v184_v3 = vpop.f32.mrf.mxu3 }
 0x126   :  { %v185_v4 = vadd.f32 %v422_v60, %v184_v3 }
 0x128   :  { %v201_v7 = vmax.f32 %v185_v4, 0.0 }
 0x12d   :  { %v186_v5 = vpop.f32.mrf.mxu3 }
 0x12e   :  { %v187_v6 = vadd.f32 %v422_v60, %v186_v5 }
 0x130   :  { %v202_v8 = vmax.f32 %v187_v6, 0.0 }
 0x132   :  { %v208_v9 = vpack.c.bf16 %v202_v8, %v201_v7 }
 0x134   :  { %292 = vmatmul.bf16.vlgmr.msra.gmra.mxu2 %v208_v9 }
 0x135   :  { %v189_v10 = vpop.f32.mrf.mxu3 }
 0x136   :  { %v190_v11 = vadd.f32 %v422_v60, %v189_v10 }
 0x138   :  { %v203_v14 = vmax.f32 %v190_v11, 0.0 }
 0x13d   :  { %v191_v12 = vpop.f32.mrf.mxu3 }
 0x13e   :  { %v192_v13 = vadd.f32 %v422_v60, %v191_v12 }
 0x140   :  { %v204_v15 = vmax.f32 %v192_v13, 0.0 }
 0x142   :  { %v209_v16 = vpack.c.bf16 %v204_v15, %v203_v14 }
 0x144   :  { %297 = vmatmul.bf16.gmra.mxu2 %v209_v16 }
 0x145   :  { %v194_v17 = vpop.f32.mrf.mxu3 }
 0x146   :  { %v195_v18 = vadd.f32 %v422_v60, %v194_v17 }
 0x148   :  { %v205_v21 = vmax.f32 %v195_v18, 0.0 }
 0x14d   :  { %v196_v19 = vpop.f32.mrf.mxu3 }
 0x14e   :  { %v197_v20 = vadd.f32 %v422_v60, %v196_v19 }
 0x150   :  { %v206_v22 = vmax.f32 %v197_v20, 0.0 }
 0x152   :  { %v210_v23 = vpack.c.bf16 %v206_v22, %v205_v21 }
 0x154   :  { %302 = vmatmul.bf16.gmra.mxu2 %v210_v23 }
 0x19b   :  { %v288_v25 = vpop.f32.mrf.mxu1 }
 0x19c   :  { %v289_v26 = vadd.f32 %v423_v24, %v288_v25 }
 0x19e   :  { %309 = vst.msk [vmem:[%s591_s7] sm:$0xff] %vm308_vm2, %v289_v26 }
 0x1a3   :  { %v290_v27 = vpop.f32.mrf.mxu1 }
 0x1a4   :  { %v291_v28 = vadd.f32 %v423_v24, %v290_v27 }
 0x1a6   :  { %310 = vst.msk [vmem:[%s591_s7 + $0x8] sm:$0xff] %vm308_vm2, %v291_v28 }
 0x1b7   :  { %v293_v29 = vpop.f32.mrf.mxu2 }
 0x1b8   :  { %v294_v30 = vadd.f32 %v423_v24, %v293_v29 }
 0x1ba   :  { %311 = vst.msk [vmem:[%s591_s7 + $0x10] sm:$0xff] %vm308_vm2, %v294_v30 }
 0x1bf   :  { %v295_v31 = vpop.f32.mrf.mxu2 }
 0x1c0   :  { %v296_v32 = vadd.f32 %v423_v24, %v295_v31 }
 0x1c2   :  { %312 = vst.msk [vmem:[%s591_s7 + $0x18] sm:$0xff] %vm308_vm2, %v296_v32 }
 0x1c7   :  { %v298_v33 = vpop.f32.mrf.mxu2 }
 0x1c8   :  { %v299_v34 = vadd.f32 %v423_v24, %v298_v33 }
 0x1ca   :  { %313 = vst.msk [vmem:[%s591_s7 + $0x20] sm:$0xff] %vm308_vm2, %v299_v34 }
 0x1cf   :  { %v300_v35 = vpop.f32.mrf.mxu2 }
 0x1d0   :  { %v301_v36 = vadd.f32 %v423_v24, %v300_v35 }
 0x1d2   :  { %314 = vst.msk [vmem:[%s591_s7 + $0x28] sm:$0xff] %vm308_vm2, %v301_v36 }
 0x1d7   :  { %v303_v37 = vpop.f32.mrf.mxu2 }
 0x1d8   :  { %v304_v38 = vadd.f32 %v423_v24, %v303_v37 }
 0x1da   :  { %315 = vst.msk [vmem:[%s591_s7 + $0x30] sm:$0xff] %vm308_vm2, %v304_v38 }
 0x1df   :  { %v305_v39 = vpop.f32.mrf.mxu2 }
 0x1e0   :  { %v306_v40 = vadd.f32 %v423_v24, %v305_v39 }
 0x1e2   :  { %316 = vst.msk [vmem:[%s591_s7 + $0x38] sm:$0xff] %vm308_vm2, %v306_v40 }

</bundles_post_ra>
